<compile_context>
chip_gen: v7x
topology: tpu7x:2x2x1
jax: 0.10.0
libtpu: 0.0.40
codegen_flags: <defaults>
</compile_context>

<pallas_src>
import functools

import jax
import jax.numpy as jnp
from jax import lax
from jax.experimental import pallas as pl
from jax.experimental.pallas import tpu as pltpu

_LANES = 128
_SUBLANES = 8
_TARGET_BLOCK_BYTES = 2 * 1024 * 1024   # ~2 MiB per input block
_CHUNK_ROWS = 512                       # in-kernel accumulation chunk (rows)


def _masked_mse_kernel(pred_ref, tgt_ref, sum_out_ref, cnt_out_ref,
                       sum_sc, cnt_sc, *, rows_total, tile, chunk, steps):
    c = pl.program_id(0)
    i = pl.program_id(1)

    @pl.when(i == 0)
    def _init():
        sum_sc[...] = jnp.zeros_like(sum_sc)
        cnt_sc[...] = jnp.zeros_like(cnt_sc)

    # True (unclamped) first row owned by this grid step.  The BlockSpec
    # index_map clamps the DMA window to stay inside the array; correctness
    # for clamped / partially-OOB blocks comes from the row mask below.
    block_start = (c * steps + i) * tile
    n_chunks = tile // chunk

    def _accumulate(mask_rows):
        # Chunked accumulation bounds the f32 temporaries (diff, diff**2,
        # count-select) to `chunk` rows instead of a full `tile`-row block.
        def chunk_body(ci, carry):
            off = pl.multiple_of(ci * chunk, chunk)
            t = tgt_ref[pl.ds(off, chunk), :].astype(jnp.float32)
            p = pred_ref[pl.ds(off, chunk), :].astype(jnp.float32)
            valid = t > 0.0
            if mask_rows:
                # Tail / out-of-bounds rows hold undefined data: mask them.
                rid = lax.broadcasted_iota(jnp.int32, (chunk, _LANES), 0)
                limit = rows_total - block_start - ci * chunk
                valid = jnp.logical_and(valid, rid < limit)
            diff = jnp.where(valid, t - p, 0.0)
            sq = diff * diff
            ones = jnp.where(valid, 1.0, 0.0)
            # Fold (chunk, 128) onto the vreg-shaped (8, 128) accumulators
            # with plain whole-vreg VPU adds (no cross-lane work in the loop).
            # Note: on v7x with bf16 inputs this reduce could be offloaded to
            # the idle MXU via a ones-vector matmul if the VALU ever binds.
            sum_sc[...] += jnp.sum(sq.reshape(-1, _SUBLANES, _LANES), axis=0)
            cnt_sc[...] += jnp.sum(ones.reshape(-1, _SUBLANES, _LANES), axis=0)
            return carry

        lax.fori_loop(0, n_chunks, chunk_body, 0)

    interior = block_start + tile <= rows_total

    @pl.when(interior)
    def _fast():
        _accumulate(False)

    @pl.when(jnp.logical_not(interior))
    def _tail():
        _accumulate(True)

    @pl.when(i == steps - 1)
    def _finalize():
        sum_out_ref[0] = sum_sc[...]
        cnt_out_ref[0] = cnt_sc[...]


def _round_up(x, m):
    return ((x + m - 1) // m) * m


def masked_mse_loss(pred, target):
    """Masked MSE: mean((target - pred)[target > 0] ** 2). Returns f32 scalar."""
    assert pred.shape == target.shape, "inconsistent dimensions"
    total = int(pred.size)
    if total == 0:
        return jnp.float32(jnp.nan)

    itemsize = max(jnp.dtype(pred.dtype).itemsize,
                   jnp.dtype(target.dtype).itemsize)

    rows = total // _LANES
    if total % _LANES == 0 and rows >= _SUBLANES:
        # Fast path: free reshape to a lane-dense (rows, 128) slab, no copy.
        slab_rows = rows

        def prep(x):
            return x.reshape(slab_rows, _LANES)
    else:
        # Rare ragged / tiny-input fallback: zero-pad the flat tail to whole
        # (8, 128) vregs.  Padded target == 0 is excluded by the mask.
        padded = _round_up(total, _SUBLANES * _LANES)
        slab_rows = padded // _LANES

        def prep(x):
            flat = jnp.pad(x.reshape(-1), (0, padded - total))
            return flat.reshape(slab_rows, _LANES)

    # Block sizing by bytes: ~2 MiB per input block (f32 -> 4096 rows,
    # bf16 -> 8192 rows).  2 inputs x 2 pipeline buffers x 2 MiB = 8 MiB VMEM.
    tile_target = max(_SUBLANES,
                      (_TARGET_BLOCK_BYTES // (_LANES * itemsize))
                      // _SUBLANES * _SUBLANES)
    tile = min(tile_target, (slab_rows // _SUBLANES) * _SUBLANES)
    chunk = _CHUNK_ROWS if tile % _CHUNK_ROWS == 0 else tile

    nblocks = pl.cdiv(slab_rows, tile)
    ncores = 2 if nblocks >= 2 else 1     # leading "parallel" axis (v7x 2-TC)
    steps = pl.cdiv(nblocks, ncores)
    last_block = nblocks - 1

    def in_index(c, i):
        # Clamp so the DMA window always stays inside the array; the kernel's
        # row mask discards rows this (unclamped) step does not own.
        return (jnp.minimum(c * steps + i, last_block), 0)

    in_spec = pl.BlockSpec((tile, _LANES), in_index)
    out_spec = pl.BlockSpec((1, _SUBLANES, _LANES), lambda c, i: (c, 0, 0))
    part_shape = jax.ShapeDtypeStruct((ncores, _SUBLANES, _LANES), jnp.float32)

    kernel = functools.partial(_masked_mse_kernel, rows_total=slab_rows,
                               tile=tile, chunk=chunk, steps=steps)

    sums, cnts = pl.pallas_call(
        kernel,
        out_shape=(part_shape, part_shape),
        grid_spec=pltpu.PrefetchScalarGridSpec(
            num_scalar_prefetch=0,
            grid=(ncores, steps),
            in_specs=[in_spec, in_spec],
            out_specs=[out_spec, out_spec],
            scratch_shapes=[
                pltpu.VMEM((_SUBLANES, _LANES), jnp.float32),  # sq-diff partials
                pltpu.VMEM((_SUBLANES, _LANES), jnp.float32),  # valid-count
            ],
        ),
        compiler_params=pltpu.CompilerParams(
            dimension_semantics=("parallel", "arbitrary"),
            vmem_limit_bytes=32 * 1024 * 1024),
        cost_estimate=pl.CostEstimate(
            flops=8 * total,
            transcendentals=0,
            bytes_accessed=total * (jnp.dtype(pred.dtype).itemsize
                                    + jnp.dtype(target.dtype).itemsize)),
    )(prep(pred), prep(target))

    # Tiny finalize in the wrapper.  0/0 -> NaN matches PyTorch's mean over an
    # empty selection.  (f32 count is exact up to ~1.7e10 valid elements.)
    return jnp.sum(sums) / jnp.sum(cnts)


if __name__ == "__main__":
    key = jax.random.PRNGKey(0)

    def reference(pred, target):
        mask = target > 0
        diff = jnp.where(mask, target - pred, 0.0).astype(jnp.float32)
        return jnp.sum(diff * diff) / jnp.sum(mask.astype(jnp.float32))

    shapes = [
        (2, 4, 16, 16),     # primary small NCHW case (zero-copy, single block)
        (8, 8, 96, 128),    # multi-block, 2-core split, partial tail block
        (2, 3, 5, 7),       # ragged fallback (pads to one (8,128) vreg slab)
        (5, 13, 128, 128),  # odd block count -> fully-OOB clamped block path
    ]
    for shape in shapes:
        kp, kt, key = jax.random.split(key, 3)
        pred = jax.random.normal(kp, shape, dtype=jnp.float32)
        target = jax.random.normal(kt, shape, dtype=jnp.float32)
        loss = jax.block_until_ready(masked_mse_loss(pred, target))
        ref = reference(pred, target)
        assert jnp.allclose(loss, ref, rtol=1e-4, atol=1e-6), (shape, loss, ref)

    print("KERNEL_OK")
</pallas_src>

<mosaic_0001>
module attributes {stable_mosaic.version = 11 : i64} {
  func.func @_masked_mse_kernel(%arg0: i32, %arg1: i32, %arg2: memref<16x128xf32, #tpu.memory_space<vmem>>, %arg3: memref<16x128xf32, #tpu.memory_space<vmem>>, %arg4: memref<1x8x128xf32, #tpu.memory_space<vmem>>, %arg5: memref<1x8x128xf32, #tpu.memory_space<vmem>>, %arg6: memref<8x128xf32, #tpu.memory_space<vmem>>, %arg7: memref<8x128xf32, #tpu.memory_space<vmem>>) attributes {dimension_semantics = [#tpu.dimension_semantics<parallel>, #tpu.dimension_semantics<arbitrary>], iteration_bounds = array<i64: 1, 1>, scalar_prefetch = 0 : i64, scratch_operands = 2 : i64, tpu.core_type = #tpu.core_type<tc>, window_params = [{transform_indices = @transform_0, window_bounds = array<i64: 16, 128>}, {transform_indices = @transform_1, window_bounds = array<i64: 16, 128>}, {transform_indices = @transform_2, window_bounds = array<i64: 1, 8, 128>}, {transform_indices = @transform_3, window_bounds = array<i64: 1, 8, 128>}]} {
    %c0_i32 = arith.constant 0 : i32
    %0 = arith.cmpi eq, %arg1, %c0_i32 : i32
    %1 = arith.extui %0 : i1 to i32
    %c0_i32_0 = arith.constant 0 : i32
    %2 = arith.cmpi ne, %1, %c0_i32_0 : i32
    scf.if %2 {
      %cst = arith.constant 0.000000e+00 : f32
      %16 = vector.broadcast %cst : f32 to vector<8x128xf32>
      %c0 = arith.constant 0 : index
      %c0_7 = arith.constant 0 : index
      %17 = vector.load %arg6[%c0, %c0_7] : memref<8x128xf32, #tpu.memory_space<vmem>>, vector<8x128xf32>
      tpu.vector_store %arg6[%c0, %c0_7], %16 {strides = array<i32>} : memref<8x128xf32, #tpu.memory_space<vmem>>, vector<8x128xf32>,
      %cst_8 = arith.constant 0.000000e+00 : f32
      %18 = vector.broadcast %cst_8 : f32 to vector<8x128xf32>
      %c0_9 = arith.constant 0 : index
      %c0_10 = arith.constant 0 : index
      %19 = vector.load %arg7[%c0_9, %c0_10] : memref<8x128xf32, #tpu.memory_space<vmem>>, vector<8x128xf32>
      tpu.vector_store %arg7[%c0_9, %c0_10], %18 {strides = array<i32>} : memref<8x128xf32, #tpu.memory_space<vmem>>, vector<8x128xf32>,
    } else {
    }
    %c1_i32 = arith.constant 1 : i32
    %3 = arith.muli %arg0, %c1_i32 : i32
    %4 = arith.addi %3, %arg1 : i32
    %c16_i32 = arith.constant 16 : i32
    %5 = arith.muli %4, %c16_i32 : i32
    %c16_i32_1 = arith.constant 16 : i32
    %6 = arith.addi %5, %c16_i32_1 : i32
    %c16_i32_2 = arith.constant 16 : i32
    %7 = arith.cmpi sle, %6, %c16_i32_2 : i32
    %8 = arith.extui %7 : i1 to i32
    %c0_i32_3 = arith.constant 0 : i32
    %9 = arith.cmpi ne, %8, %c0_i32_3 : i32
    scf.if %9 {
      %c0_i32_7 = arith.constant 0 : i32
      %c16_i32_8 = arith.constant 16 : i32
      %16 = arith.muli %c0_i32_7, %c16_i32_8 : i32
      %17 = tpu.assume_multiple %16, 16 : i32
      %18 = arith.index_cast %17 : i32 to index
      %c0 = arith.constant 0 : index
      %19 = vector.load %arg3[%18, %c0] : memref<16x128xf32, #tpu.memory_space<vmem>>, vector<16x128xf32>
      %20 = arith.index_cast %17 : i32 to index
      %c0_9 = arith.constant 0 : index
      %21 = vector.load %arg2[%20, %c0_9] : memref<16x128xf32, #tpu.memory_space<vmem>>, vector<16x128xf32>
      %cst = arith.constant 0.000000e+00 : f32
      %22 = vector.broadcast %cst : f32 to vector<16x128xf32>
      %23 = arith.cmpf ogt, %19, %22 : vector<16x128xf32>
      %24 = arith.subf %19, %21 : vector<16x128xf32>
      %cst_10 = arith.constant 0.000000e+00 : f32
      %25 = vector.broadcast %cst_10 : f32 to vector<16x128xf32>
      %26 = arith.select %23, %24, %25 : vector<16x128xi1>, vector<16x128xf32>
      %27 = arith.mulf %26, %26 : vector<16x128xf32>
      %cst_11 = arith.constant 1.000000e+00 : f32
      %cst_12 = arith.constant 0.000000e+00 : f32
      %28 = vector.broadcast %cst_11 : f32 to vector<16x128xf32>
      %29 = vector.broadcast %cst_12 : f32 to vector<16x128xf32>
      %30 = arith.select %23, %28, %29 : vector<16x128xi1>, vector<16x128xf32>
      %c0_13 = arith.constant 0 : index
      %c0_14 = arith.constant 0 : index
      %31 = vector.load %arg6[%c0_13, %c0_14] : memref<8x128xf32, #tpu.memory_space<vmem>>, vector<8x128xf32>
      %32 = vector.shape_cast %27 : vector<16x128xf32> to vector<2x8x128xf32>
      %cst_15 = arith.constant dense<0.000000e+00> : vector<8x128xf32>
      %33 = vector.multi_reduction <add>, %32, %cst_15 [0] : vector<2x8x128xf32> to vector<8x128xf32>
      %34 = arith.addf %31, %33 : vector<8x128xf32>
      %c0_16 = arith.constant 0 : index
      %c0_17 = arith.constant 0 : index
      %35 = vector.load %arg6[%c0_16, %c0_17] : memref<8x128xf32, #tpu.memory_space<vmem>>, vector<8x128xf32>
      tpu.vector_store %arg6[%c0_16, %c0_17], %34 {strides = array<i32>} : memref<8x128xf32, #tpu.memory_space<vmem>>, vector<8x128xf32>,
      %c0_18 = arith.constant 0 : index
      %c0_19 = arith.constant 0 : index
      %36 = vector.load %arg7[%c0_18, %c0_19] : memref<8x128xf32, #tpu.memory_space<vmem>>, vector<8x128xf32>
      %37 = vector.shape_cast %30 : vector<16x128xf32> to vector<2x8x128xf32>
      %cst_20 = arith.constant dense<0.000000e+00> : vector<8x128xf32>
      %38 = vector.multi_reduction <add>, %37, %cst_20 [0] : vector<2x8x128xf32> to vector<8x128xf32>
      %39 = arith.addf %36, %38 : vector<8x128xf32>
      %c0_21 = arith.constant 0 : index
      %c0_22 = arith.constant 0 : index
      %40 = vector.load %arg7[%c0_21, %c0_22] : memref<8x128xf32, #tpu.memory_space<vmem>>, vector<8x128xf32>
      tpu.vector_store %arg7[%c0_21, %c0_22], %39 {strides = array<i32>} : memref<8x128xf32, #tpu.memory_space<vmem>>, vector<8x128xf32>,
      %c1_i32_23 = arith.constant 1 : i32
    } else {
    }
    %true = arith.constant true
    %10 = arith.xori %7, %true : i1
    %11 = arith.extui %10 : i1 to i32
    %c0_i32_4 = arith.constant 0 : i32
    %12 = arith.cmpi ne, %11, %c0_i32_4 : i32
    scf.if %12 {
      %c0_i32_7 = arith.constant 0 : i32
      %c16_i32_8 = arith.constant 16 : i32
      %16 = arith.muli %c0_i32_7, %c16_i32_8 : i32
      %17 = tpu.assume_multiple %16, 16 : i32
      %18 = arith.index_cast %17 : i32 to index
      %c0 = arith.constant 0 : index
      %19 = vector.load %arg3[%18, %c0] : memref<16x128xf32, #tpu.memory_space<vmem>>, vector<16x128xf32>
      %20 = arith.index_cast %17 : i32 to index
      %c0_9 = arith.constant 0 : index
      %21 = vector.load %arg2[%20, %c0_9] : memref<16x128xf32, #tpu.memory_space<vmem>>, vector<16x128xf32>
      %cst = arith.constant 0.000000e+00 : f32
      %22 = vector.broadcast %cst : f32 to vector<16x128xf32>
      %23 = arith.cmpf ogt, %19, %22 : vector<16x128xf32>
      %24 = tpu.iota {dimensions = array<i32: 0>} : vector<16x128xi32>
      %c16_i32_10 = arith.constant 16 : i32
      %25 = arith.subi %c16_i32_10, %5 : i32
      %c16_i32_11 = arith.constant 16 : i32
      %26 = arith.muli %c0_i32_7, %c16_i32_11 : i32
      %27 = arith.subi %25, %26 : i32
      %28 = vector.broadcast %27 : i32 to vector<16x128xi32>
      %29 = arith.cmpi slt, %24, %28 : vector<16x128xi32>
      %30 = arith.andi %23, %29 : vector<16x128xi1>
      %31 = arith.subf %19, %21 : vector<16x128xf32>
      %cst_12 = arith.constant 0.000000e+00 : f32
      %32 = vector.broadcast %cst_12 : f32 to vector<16x128xf32>
      %33 = arith.select %30, %31, %32 : vector<16x128xi1>, vector<16x128xf32>
      %34 = arith.mulf %33, %33 : vector<16x128xf32>
      %cst_13 = arith.constant 1.000000e+00 : f32
      %cst_14 = arith.constant 0.000000e+00 : f32
      %35 = vector.broadcast %cst_13 : f32 to vector<16x128xf32>
      %36 = vector.broadcast %cst_14 : f32 to vector<16x128xf32>
      %37 = arith.select %30, %35, %36 : vector<16x128xi1>, vector<16x128xf32>
      %c0_15 = arith.constant 0 : index
      %c0_16 = arith.constant 0 : index
      %38 = vector.load %arg6[%c0_15, %c0_16] : memref<8x128xf32, #tpu.memory_space<vmem>>, vector<8x128xf32>
      %39 = vector.shape_cast %34 : vector<16x128xf32> to vector<2x8x128xf32>
      %cst_17 = arith.constant dense<0.000000e+00> : vector<8x128xf32>
      %40 = vector.multi_reduction <add>, %39, %cst_17 [0] : vector<2x8x128xf32> to vector<8x128xf32>
      %41 = arith.addf %38, %40 : vector<8x128xf32>
      %c0_18 = arith.constant 0 : index
      %c0_19 = arith.constant 0 : index
      %42 = vector.load %arg6[%c0_18, %c0_19] : memref<8x128xf32, #tpu.memory_space<vmem>>, vector<8x128xf32>
      tpu.vector_store %arg6[%c0_18, %c0_19], %41 {strides = array<i32>} : memref<8x128xf32, #tpu.memory_space<vmem>>, vector<8x128xf32>,
      %c0_20 = arith.constant 0 : index
      %c0_21 = arith.constant 0 : index
      %43 = vector.load %arg7[%c0_20, %c0_21] : memref<8x128xf32, #tpu.memory_space<vmem>>, vector<8x128xf32>
      %44 = vector.shape_cast %37 : vector<16x128xf32> to vector<2x8x128xf32>
      %cst_22 = arith.constant dense<0.000000e+00> : vector<8x128xf32>
      %45 = vector.multi_reduction <add>, %44, %cst_22 [0] : vector<2x8x128xf32> to vector<8x128xf32>
      %46 = arith.addf %43, %45 : vector<8x128xf32>
      %c0_23 = arith.constant 0 : index
      %c0_24 = arith.constant 0 : index
      %47 = vector.load %arg7[%c0_23, %c0_24] : memref<8x128xf32, #tpu.memory_space<vmem>>, vector<8x128xf32>
      tpu.vector_store %arg7[%c0_23, %c0_24], %46 {strides = array<i32>} : memref<8x128xf32, #tpu.memory_space<vmem>>, vector<8x128xf32>,
      %c1_i32_25 = arith.constant 1 : i32
    } else {
    }
    %c0_i32_5 = arith.constant 0 : i32
    %13 = arith.cmpi eq, %arg1, %c0_i32_5 : i32
    %14 = arith.extui %13 : i1 to i32
    %c0_i32_6 = arith.constant 0 : i32
    %15 = arith.cmpi ne, %14, %c0_i32_6 : i32
    scf.if %15 {
      %c0 = arith.constant 0 : index
      %c0_7 = arith.constant 0 : index
      %16 = vector.load %arg6[%c0, %c0_7] : memref<8x128xf32, #tpu.memory_space<vmem>>, vector<8x128xf32>
      %c0_8 = arith.constant 0 : index
      %c0_9 = arith.constant 0 : index
      %c0_10 = arith.constant 0 : index
      %17 = vector.load %arg4[%c0_8, %c0_9, %c0_10] : memref<1x8x128xf32, #tpu.memory_space<vmem>>, vector<1x8x128xf32>
      %18 = vector.shape_cast %17 : vector<1x8x128xf32> to vector<8x128xf32>
      %19 = vector.shape_cast %16 : vector<8x128xf32> to vector<1x8x128xf32>
      tpu.vector_store %arg4[%c0_8, %c0_9, %c0_10], %19 {strides = array<i32>} : memref<1x8x128xf32, #tpu.memory_space<vmem>>, vector<1x8x128xf32>,
      %c0_11 = arith.constant 0 : index
      %c0_12 = arith.constant 0 : index
      %20 = vector.load %arg7[%c0_11, %c0_12] : memref<8x128xf32, #tpu.memory_space<vmem>>, vector<8x128xf32>
      %c0_13 = arith.constant 0 : index
      %c0_14 = arith.constant 0 : index
      %c0_15 = arith.constant 0 : index
      %21 = vector.load %arg5[%c0_13, %c0_14, %c0_15] : memref<1x8x128xf32, #tpu.memory_space<vmem>>, vector<1x8x128xf32>
      %22 = vector.shape_cast %21 : vector<1x8x128xf32> to vector<8x128xf32>
      %23 = vector.shape_cast %20 : vector<8x128xf32> to vector<1x8x128xf32>
      tpu.vector_store %arg5[%c0_13, %c0_14, %c0_15], %23 {strides = array<i32>} : memref<1x8x128xf32, #tpu.memory_space<vmem>>, vector<1x8x128xf32>,
    } else {
    }
    return
  }
  func.func @transform_0(%arg0: i32, %arg1: i32) -> (i32, i32) {
    %c1_i32 = arith.constant 1 : i32
    %0 = arith.muli %arg0, %c1_i32 : i32
    %1 = arith.addi %0, %arg1 : i32
    %c0_i32 = arith.constant 0 : i32
    %2 = arith.minsi %1, %c0_i32 : i32
    %c0_i32_0 = arith.constant 0 : i32
    %c0_i32_1 = arith.constant 0 : i32
    return %2, %c0_i32_0 : i32, i32
  }
  func.func @transform_1(%arg0: i32, %arg1: i32) -> (i32, i32) {
    %c1_i32 = arith.constant 1 : i32
    %0 = arith.muli %arg0, %c1_i32 : i32
    %1 = arith.addi %0, %arg1 : i32
    %c0_i32 = arith.constant 0 : i32
    %2 = arith.minsi %1, %c0_i32 : i32
    %c0_i32_0 = arith.constant 0 : i32
    %c0_i32_1 = arith.constant 0 : i32
    return %2, %c0_i32_0 : i32, i32
  }
  func.func @transform_2(%arg0: i32, %arg1: i32) -> (i32, i32, i32) {
    %c0_i32 = arith.constant 0 : i32
    %c0_i32_0 = arith.constant 0 : i32
    %c0_i32_1 = arith.constant 0 : i32
    return %arg0, %c0_i32, %c0_i32_0 : i32, i32, i32
  }
  func.func @transform_3(%arg0: i32, %arg1: i32) -> (i32, i32, i32) {
    %c0_i32 = arith.constant 0 : i32
    %c0_i32_0 = arith.constant 0 : i32
    %c0_i32_1 = arith.constant 0 : i32
    return %arg0, %c0_i32, %c0_i32_0 : i32, i32, i32
  }
}

</mosaic_0001>

<bundles_post_ra>
// kernel: tpu_custom_call.1
= control target key start
LH: loop header
LB: loop body
LE: loop exit
PB: predicated region body
PF: predicated region fallthrough
CT: control target
= control target key end

     0   :  { %9 = vsyncpa [#allocation5], 0  ;;  %s352_s0 = inlined_call_operand.hbm [shape: f32[16,128], index: 0, kind: input, shape index: {}]   ;;  %s353_s1 = inlined_call_operand.hbm [shape: f32[16,128], index: 1, kind: input, shape index: {}]   ;;  %s354_s2 = inlined_call_operand.hbm [shape: f32[1,8,128], index: 2, kind: output, shape index: {0}]   ;;  %s355_s3 = inlined_call_operand.hbm [shape: f32[1,8,128], index: 3, kind: output, shape index: {1}]  }
   0x1   :  { %10 = vsyncpa [#allocation8], 0 }
   0x2   :  { %11 = vsyncpa [#allocation6], 0 }
   0x3   :  { %12 = vsyncpa [#allocation11], 0  ;;  %s277_s12 = smov [#allocation4]   ;;  %s181_s16 = scalar_lea.hbm %s352_s0, 256 }
   0x4   :  { %s24_s13 = sshll.u32 %s277_s12, 4  ;;  %p182_p0 = scmp.ne.s32.totalorder %s352_s0, %s181_s16  ;;  %s25_s13 = int_to_ptr.vmem [resolvable:$true] %s24_s13 }
   0x5   :  { %p185_p1 = scmp.lt.u32.totalorder %s181_s16, %s352_s0 }
   0x7   :  { %p187_p2 = pnand %p185_p1, %p182_p0 }
   0x9   :  { %190 = shalt.err (!%p187_p2)
}
   0xa   :  { %s191_s21 = scalar_lea.vmem %s25_s13, 256  ;;  %p196_p4 = scmp.lt.s32.totalorder %s25_s13, %s25_s13 }
   0xb   :  { %p192_p3 = scmp.ne.s32.totalorder %s25_s13, %s191_s21  ;;  %p197_p5 = scmp.lt.s32.totalorder %s191_s21, %s191_s21 }
   0xd   :  { %p198_p6 = por %p197_p5, %p196_p4 }
   0xf   :  { %p199_p7 = pnand %p198_p6, %p192_p3 }
  0x11   :  { %202 = shalt.err (!%p199_p7)
}
  0x12   :  { %s278_s22 = smov 128   ;;  %s279_s23 = smov 8  }
  0x13   :  { %30 = dma.hbm_to_vmem [thread:$0]  %s352_s0, 256, %s25_s13, [#allocation5], %s278_s22, %s278_s22, %s279_s23  }
  0x14   :  { %s280_s26 = smov [#allocation7]   ;;  %s203_s30 = scalar_lea.hbm %s353_s1, 256 }
  0x15   :  { %s42_s27 = sshll.u32 %s280_s26, 4  ;;  %p204_p8 = scmp.ne.s32.totalorder %s353_s1, %s203_s30  ;;  %s43_s27 = int_to_ptr.vmem [resolvable:$true] %s42_s27 }
  0x16   :  { %p207_p9 = scmp.lt.u32.totalorder %s203_s30, %s353_s1 }
  0x18   :  { %p209_p10 = pnand %p207_p9, %p204_p8 }
  0x1a   :  { %212 = shalt.err (!%p209_p10)
}
  0x1b   :  { %s213_s8 = scalar_lea.vmem %s43_s27, 256  ;;  %p218_p12 = scmp.lt.s32.totalorder %s43_s27, %s43_s27 }
  0x1c   :  { %p214_p11 = scmp.ne.s32.totalorder %s43_s27, %s213_s8  ;;  %p219_p13 = scmp.lt.s32.totalorder %s213_s8, %s213_s8 }
  0x1e   :  { %p220_p0 = por %p219_p13, %p218_p12 }
  0x20   :  { %p221_p1 = pnand %p220_p0, %p214_p11 }
  0x22   :  { %224 = shalt.err (!%p221_p1)
}
  0x23   :  { %48 = dma.hbm_to_vmem [thread:$0]  %s353_s1, 256, %s43_s27, [#allocation8], %s278_s22, %s278_s22, %s279_s23  }
  0x24   :  { %269 = dma.done.wait [#allocation5], 256  }
  0x25   :  { %270 = vsyncadd [#allocation5], 4294967040 }
  0x26   :  { %271 = dma.done.wait [#allocation8], 256  }
  0x27   :  { %272 = vsyncadd [#allocation8], 4294967040  ;;  %v76_v0 = vld [vmem:[#allocation7] sm:$0xff]  ;;  %v77_v1 = vld [vmem:[#allocation7 + $0x8] sm:$0xff]  ;;  %s281_s10 = smov [#allocation10]   ;;  %v282_v6 = vmov 0.0  }
  0x28   :  { %v78_v2 = vld [vmem:[#allocation4] sm:$0xff]  ;;  %s156_s11 = sshll.u32 %s281_s10, 4  ;;  %v79_v3 = vld [vmem:[#allocation4 + $0x8] sm:$0xff]  ;;  %vm80_vm0 = vcmp.gt.f32.partialorder %v76_v0, 0.0  ;;  %vm81_vm1 = vcmp.gt.f32.partialorder %v77_v1, 0.0  ;;  %s283_s1 = smov [#allocation9]   ;;  %s157_s11 = int_to_ptr.vmem [resolvable:$true] %s156_s11 }
  0x29   :  { %v82_v4 = vsub.f32 %v76_v0, %v78_v2  ;;  %v83_v5 = vsub.f32 %v77_v1, %v79_v3  ;;  %v88_v7 = vsel %vm80_vm0, 1.0, %v282_v6  ;;  %v89_v8 = vsel %vm81_vm1, 1.0, %v282_v6  ;;  %s146_s12 = sshll.u32 %s283_s1, 4  ;;  %s225_s13 = scalar_lea.vmem %s157_s11, 128  ;;  %s147_s12 = int_to_ptr.vmem [resolvable:$true] %s146_s12 }
  0x2a   :  { %v95_v10 = vadd.f32 %v89_v8, %v88_v7  ;;  %p226_p2 = scmp.ne.s32.totalorder %s157_s11, %s225_s13  ;;  %p230_p3 = scmp.lt.s32.totalorder %s157_s11, %s157_s11 }
  0x2b   :  { %v84_v9 = vsel %vm80_vm0, %v82_v4, 0.0  ;;  %v85_v11 = vsel %vm81_vm1, %v83_v5, 0.0  ;;  %p231_p4 = scmp.lt.s32.totalorder %s225_s13, %s225_s13 }
  0x2c   :  { %v86_v12 = vmul.f32 %v84_v9, %v84_v9  ;;  %v87_v13 = vmul.f32 %v85_v11, %v85_v11  ;;  %139 = vst [vmem:[#allocation10] sm:$0xff] %v95_v10 }
  0x2d   :  { %p232_p5 = por %p231_p4, %p230_p3 }
  0x2f   :  { %p233_p6 = pnand %p232_p5, %p226_p2 }
  0x31   :  { %236 = shalt.err (!%p233_p6)
}
  0x32   :  { %s237_s16 = scalar_lea.hbm %s355_s3, 128 }
  0x33   :  { %p238_p7 = scmp.ne.s32.totalorder %s355_s3, %s237_s16  ;;  %p241_p8 = scmp.lt.u32.totalorder %s237_s16, %s355_s3 }
  0x35   :  { %p243_p9 = pnand %p241_p8, %p238_p7 }
  0x37   :  { %246 = shalt.err (!%p243_p9)
}
  0x38   :  { %159 = dma.vmem_to_hbm [thread:$0]  %s157_s11, 128, %s355_s3, [#allocation11]   ;;  %v91_v14 = vadd.f32 %v87_v13, %v86_v12 }
  0x39   :  { %s247_s23 = scalar_lea.vmem %s147_s12, 128  ;;  %p252_p11 = scmp.lt.s32.totalorder %s147_s12, %s147_s12 }
  0x3a   :  { %137 = vst [vmem:[#allocation9] sm:$0xff] %v91_v14  ;;  %p248_p10 = scmp.ne.s32.totalorder %s147_s12, %s247_s23  ;;  %p253_p12 = scmp.lt.s32.totalorder %s247_s23, %s247_s23 }
  0x3c   :  { %p254_p13 = por %p253_p12, %p252_p11 }
  0x3e   :  { %p255_p0 = pnand %p254_p13, %p248_p10 }
  0x40   :  { %258 = shalt.err (!%p255_p0)
}
  0x41   :  { %s259_s26 = scalar_lea.hbm %s354_s2, 128 }
  0x42   :  { %p260_p1 = scmp.ne.s32.totalorder %s354_s2, %s259_s26  ;;  %p263_p2 = scmp.lt.u32.totalorder %s259_s26, %s354_s2 }
  0x44   :  { %p265_p3 = pnand %p263_p2, %p260_p1 }
  0x46   :  { %268 = shalt.err (!%p265_p3)
}
  0x47   :  { %149 = dma.vmem_to_hbm [thread:$0]  %s147_s12, 128, %s354_s2, [#allocation6]  }
  0x48   :  { %273 = dma.done.wait [#allocation6], 128  }
  0x49   :  { %274 = vsyncadd [#allocation6], 4294967168 }
  0x4a   :  { %275 = dma.done.wait [#allocation11], 128  }
  0x4b   :  { %276 = vsyncadd [#allocation11], 4294967168 }
  0x4c   :  { %166 = vsyncpa [#allocation5], 1 }
  0x4d   :  { %167 = vsyncpa [#allocation8], 1 }
  0x4e   :  { %168 = vsyncpa [#allocation6], 1 }
  0x4f   :  { %169 = vsyncpa [#allocation11], 1 }

</bundles_post_ra>
